<compile_context>
chip_gen: v6e
topology: v6e:2x2x1
jax: 0.10.0
libtpu: 0.0.40
codegen_flags: <defaults>
</compile_context>

<pallas_src>
import jax
import jax.numpy as jnp
from jax import lax
from jax.experimental import pallas as pl
from jax.experimental.pallas import tpu as pltpu

# ----------------------------- configuration -------------------------------
VOCAB = 100
HIDDEN = 32        # disc_config.hidden_size (synthetic)
BATCH = 2
SEQ = 8
LN_EPS = 1e-5      # torch.nn.LayerNorm default

H_PAD = 128            # lane-dense output/N dim (multiple of 128)
M_ROWS = 3 * BATCH     # [q; pos; neg] CLS rows
M_PAD = 8              # sublane-dense row count (multiple of 8)
VOCAB_PAD = ((VOCAB + 7) // 8) * 8   # sublane-aligned embedding table rows
PRM_ROWS = 8           # parameter slab rows: 0=b, 1=gamma, 2=beta, rest zero


# -------- fused kernel: gather + encoder + LayerNorm + logits + NLL ---------
def fused_eledic_kernel(ids_ref, msk_ref, embed_ref, w_ref, prm_ref,
                        o_ref, x_ref):
    # ids_ref / msk_ref : SMEM int32 (M_ROWS,)  -- scalar-prefetch args
    # embed_ref         : VMEM (VOCAB_PAD, HIDDEN)
    # w_ref             : VMEM (HIDDEN, H_PAD)   (cols >= HIDDEN are zero)
    # prm_ref           : VMEM (PRM_ROWS, H_PAD) rows: b, gamma, beta, 0...
    # o_ref             : SMEM (1, 1) f32 scalar loss
    # x_ref             : VMEM scratch (M_PAD, HIDDEN) CLS-embedding slab

    # ---- in-kernel CLS gather (unrolled, 6 rows) + mask + pad -------------
    x_ref[...] = jnp.zeros((M_PAD, HIDDEN), jnp.float32)
    for r in range(M_ROWS):
        idx = ids_ref[r]
        m = msk_ref[r].astype(jnp.float32)
        x_ref[pl.ds(r, 1), :] = embed_ref[pl.ds(idx, 1), :] * m

    # ---- synthetic encoder: dense + tanh (MXU + EUP) ----------------------
    # (8, 32) @ (32, 128) -> (8, 128); pad output columns stay exactly 0
    # because W's pad columns and b's pad entries are 0 and tanh(0) = 0.
    b = prm_ref[0:1, :]
    g = prm_ref[1:2, :]
    beta = prm_ref[2:3, :]
    h = jnp.dot(x_ref[...], w_ref[...], preferred_element_type=jnp.float32)
    h = jnp.tanh(h + b)                                        # (M_PAD, H_PAD)

    # ---- LayerNorm over the real HIDDEN columns ---------------------------
    # Lane sums over 128 columns equal sums over the 32 real columns exactly
    # since h's pad columns are 0.  Variance uses the centered two-pass form
    # with pad lanes masked out (they would otherwise contribute mu^2 each).
    inv_h = jnp.float32(1.0 / HIDDEN)
    col_ids = lax.broadcasted_iota(jnp.int32, (M_PAD, H_PAD), 1)
    lane_mask = col_ids < HIDDEN
    mu = jnp.sum(h, axis=-1, keepdims=True) * inv_h
    diff = jnp.where(lane_mask, h - mu, 0.0)
    var = jnp.sum(diff * diff, axis=-1, keepdims=True) * inv_h
    y = diff * lax.rsqrt(var + LN_EPS) * g + beta              # (M_PAD, H_PAD)
    # pad columns: diff == 0 and beta == 0 there => y == 0, so the lane-wide
    # dot products below equal the true HIDDEN-wide dot products.

    # ---- q*pos / q*neg logits via one MXU y @ y^T + diagonal selection ----
    scores = lax.dot_general(y, y, (((1,), (1,)), ((), ())),
                             preferred_element_type=jnp.float32)  # (M_PAD, M_PAD)
    row = lax.broadcasted_iota(jnp.int32, (M_PAD, M_PAD), 0)
    col = lax.broadcasted_iota(jnp.int32, (M_PAD, M_PAD), 1)
    pos_sel = col == row + BATCH          # scores[i, B + i]   = q_i . pos_i
    neg_sel = col == row + 2 * BATCH      # scores[i, 2B + i]  = q_i . neg_i
    s_pos = jnp.sum(jnp.where(pos_sel, scores, 0.0), axis=-1, keepdims=True)
    s_neg = jnp.sum(jnp.where(neg_sel, scores, 0.0), axis=-1, keepdims=True)

    # ---- stable 2-way log_softmax, NLL of column 0, mean over batch -------
    m = jnp.maximum(s_pos, s_neg)
    lse = m + jnp.log(jnp.exp(s_pos - m) + jnp.exp(s_neg - m))
    nll = -(s_pos - lse)                                        # (M_PAD, 1)
    row_ids = lax.broadcasted_iota(jnp.int32, (M_PAD, 1), 0)
    valid = row_ids < BATCH
    o_ref[0, 0] = jnp.sum(jnp.where(valid, nll, 0.0)) * jnp.float32(1.0 / BATCH)


def run_fused(cls_ids, cls_msk, embed_p, w_p, prm_p):
    out = pl.pallas_call(
        fused_eledic_kernel,
        out_shape=jax.ShapeDtypeStruct((1, 1), jnp.float32),
        grid_spec=pltpu.PrefetchScalarGridSpec(
            num_scalar_prefetch=2,
            grid=(1,),
            in_specs=[
                pl.BlockSpec((VOCAB_PAD, HIDDEN), lambda i, ids, msk: (0, 0)),
                pl.BlockSpec((HIDDEN, H_PAD), lambda i, ids, msk: (0, 0)),
                pl.BlockSpec((PRM_ROWS, H_PAD), lambda i, ids, msk: (0, 0)),
            ],
            out_specs=pl.BlockSpec(memory_space=pltpu.MemorySpace.SMEM),
            scratch_shapes=[pltpu.VMEM((M_PAD, HIDDEN), jnp.float32)],
        ),
        compiler_params=pltpu.CompilerParams(
            dimension_semantics=("arbitrary",)),
    )(cls_ids, cls_msk, embed_p, w_p, prm_p)
    return out[0, 0]


# ----------------------------- param padding --------------------------------
def pad_params(p):
    """Pad parameters once, outside the jit.

    Only the output/N dim is 128-lane padded; the contraction dim (HIDDEN=32)
    stays unpadded.  b / gamma / beta are packed into one (8, 128) slab.
    All pad regions MUST be exactly zero (LN statistics and lane-wide dot
    products rely on it)."""
    embed_p = jnp.zeros((VOCAB_PAD, HIDDEN), jnp.float32).at[:VOCAB].set(p["embed"])
    w_p = jnp.zeros((HIDDEN, H_PAD), jnp.float32).at[:, :HIDDEN].set(p["w"])
    prm_p = (jnp.zeros((PRM_ROWS, H_PAD), jnp.float32)
             .at[0, :HIDDEN].set(p["b"][0])
             .at[1, :HIDDEN].set(p["ln_gamma"][0])
             .at[2, :HIDDEN].set(p["ln_beta"][0]))
    return {"embed": embed_p, "w": w_p, "prm": prm_p}


# ----------------------------- model wrapper --------------------------------
def eledic_nll_ln_forward(params_p, query_ids, attn_q,
                          input_ids_pos, attn_pos,
                          input_ids_neg, attn_neg):
    # Only the CLS token (position 0) of each sequence matters for 'cls'
    # pooling with a per-token synthetic encoder; ship just the 3*B token ids
    # and mask bits to SMEM -- the gather itself happens inside the kernel.
    cls_ids = jnp.concatenate(
        [query_ids[:, 0], input_ids_pos[:, 0], input_ids_neg[:, 0]],
        axis=0).astype(jnp.int32)
    cls_msk = jnp.concatenate(
        [attn_q[:, 0], attn_pos[:, 0], attn_neg[:, 0]],
        axis=0).astype(jnp.int32)

    loss = run_fused(cls_ids, cls_msk,
                     params_p["embed"], params_p["w"], params_p["prm"])
    return (loss,)


eledic_nll_ln_forward_jit = jax.jit(eledic_nll_ln_forward)


# ----------------------------- reference (plain JAX) -------------------------
def reference_forward(params, query_ids, attn_q, ids_pos, attn_pos,
                      ids_neg, attn_neg):
    # Full-sequence synthetic encoder + CLS pooling, unpadded: proves the
    # CLS-only / lane-padded / in-kernel-gather variant is semantics-preserving.
    def emb(ids, mask):
        e = jnp.take(params["embed"], ids, axis=0) * mask[..., None]
        h = jnp.tanh(e.reshape(-1, HIDDEN) @ params["w"] + params["b"])
        h = h.reshape(ids.shape[0], ids.shape[1], HIDDEN)[:, 0]
        mu = h.mean(-1, keepdims=True)
        var = ((h - mu) ** 2).mean(-1, keepdims=True)
        return (h - mu) / jnp.sqrt(var + LN_EPS) * params["ln_gamma"][0] \
            + params["ln_beta"][0]

    q = emb(query_ids, attn_q.astype(jnp.float32))
    p = emb(ids_pos, attn_pos.astype(jnp.float32))
    n = emb(ids_neg, attn_neg.astype(jnp.float32))
    logits = jnp.stack([(q * p).sum(-1), (q * n).sum(-1)], axis=1)   # (B, 2)
    lsm = jax.nn.log_softmax(logits, axis=1)
    return (-lsm[:, 0]).mean()


# --------------------------------- main --------------------------------------
if __name__ == "__main__":
    key = jax.random.PRNGKey(0)
    k_emb, k_w, k_b, k_g, k_ids = jax.random.split(key, 5)

    base_params = {
        "embed": jax.random.normal(k_emb, (VOCAB, HIDDEN), jnp.float32) * 0.1,
        "w": jax.random.normal(k_w, (HIDDEN, HIDDEN), jnp.float32) * 0.1,
        "b": jax.random.normal(k_b, (1, HIDDEN), jnp.float32) * 0.01,
        "ln_gamma": jnp.ones((1, HIDDEN), jnp.float32)
        + 0.05 * jax.random.normal(k_g, (1, HIDDEN), jnp.float32),
        "ln_beta": jnp.zeros((1, HIDDEN), jnp.float32),
    }
    params_padded = pad_params(base_params)

    k1, k2, k3 = jax.random.split(k_ids, 3)
    query_ids = jax.random.randint(k1, (BATCH, SEQ), 0, VOCAB)
    ids_pos = jax.random.randint(k2, (BATCH, SEQ), 0, VOCAB)
    ids_neg = jax.random.randint(k3, (BATCH, SEQ), 0, VOCAB)
    attn_q = jnp.ones((BATCH, SEQ), jnp.int32)
    attn_pos = jnp.ones((BATCH, SEQ), jnp.int32)
    attn_neg = jnp.ones((BATCH, SEQ), jnp.int32)

    (loss,) = eledic_nll_ln_forward_jit(params_padded, query_ids, attn_q,
                                        ids_pos, attn_pos, ids_neg, attn_neg)
    loss = jax.block_until_ready(loss)

    ref = jax.block_until_ready(
        reference_forward(base_params, query_ids, attn_q, ids_pos, attn_pos,
                          ids_neg, attn_neg))

    assert jnp.allclose(loss, ref, atol=1e-5, rtol=1e-5), (loss, ref)
    print("KERNEL_OK")
</pallas_src>

<mosaic_0001>
module attributes {stable_mosaic.version = 11 : i64} {
  func.func @fused_eledic_kernel(%arg0: i32, %arg1: memref<6xi32, #tpu.memory_space<smem>>, %arg2: memref<6xi32, #tpu.memory_space<smem>>, %arg3: memref<104x32xf32, #tpu.memory_space<vmem>>, %arg4: memref<32x128xf32, #tpu.memory_space<vmem>>, %arg5: memref<8x128xf32, #tpu.memory_space<vmem>>, %arg6: memref<1x1xf32, #tpu.memory_space<smem>>, %arg7: memref<8x32xf32, #tpu.memory_space<vmem>>) attributes {dimension_semantics = [#tpu.dimension_semantics<arbitrary>], iteration_bounds = array<i64: 1>, scalar_prefetch = 2 : i64, scratch_operands = 1 : i64, tpu.core_type = #tpu.core_type<tc>, window_params = [{pipeline_mode = #tpu.pipeline_mode<synchronous>, transform_indices = @transform_0, window_bounds = array<i64: 104, 32>}, {pipeline_mode = #tpu.pipeline_mode<synchronous>, transform_indices = @transform_1, window_bounds = array<i64: 32, 128>}, {pipeline_mode = #tpu.pipeline_mode<synchronous>, transform_indices = @transform_2, window_bounds = array<i64: 8, 128>}, {transform_indices = @transform_3, window_bounds = array<i64: 1, 1>}]} {
    %cst = arith.constant 0.000000e+00 : f32
    %0 = vector.broadcast %cst : f32 to vector<8x32xf32>
    %c0 = arith.constant 0 : index
    %c0_0 = arith.constant 0 : index
    %1 = vector.load %arg7[%c0, %c0_0] : memref<8x32xf32, #tpu.memory_space<vmem>>, vector<8x32xf32>
    tpu.vector_store %arg7[%c0, %c0_0], %0 {strides = array<i32>} : memref<8x32xf32, #tpu.memory_space<vmem>>, vector<8x32xf32>,
    %c0_1 = arith.constant 0 : index
    %2 = memref.load %arg1[%c0_1] : memref<6xi32, #tpu.memory_space<smem>>
    %c0_2 = arith.constant 0 : index
    %3 = memref.load %arg2[%c0_2] : memref<6xi32, #tpu.memory_space<smem>>
    %4 = arith.sitofp %3 : i32 to f32
    %5 = arith.index_cast %2 : i32 to index
    %c0_3 = arith.constant 0 : index
    %6 = vector.load %arg3[%5, %c0_3] : memref<104x32xf32, #tpu.memory_space<vmem>>, vector<1x32xf32>
    %7 = vector.broadcast %4 : f32 to vector<1x32xf32>
    %8 = arith.mulf %6, %7 : vector<1x32xf32>
    %c0_4 = arith.constant 0 : index
    %c0_5 = arith.constant 0 : index
    %9 = vector.load %arg7[%c0_4, %c0_5] : memref<8x32xf32, #tpu.memory_space<vmem>>, vector<1x32xf32>
    tpu.vector_store %arg7[%c0_4, %c0_5], %8 {strides = array<i32>} : memref<8x32xf32, #tpu.memory_space<vmem>>, vector<1x32xf32>,
    %c1 = arith.constant 1 : index
    %10 = memref.load %arg1[%c1] : memref<6xi32, #tpu.memory_space<smem>>
    %c1_6 = arith.constant 1 : index
    %11 = memref.load %arg2[%c1_6] : memref<6xi32, #tpu.memory_space<smem>>
    %12 = arith.sitofp %11 : i32 to f32
    %13 = arith.index_cast %10 : i32 to index
    %c0_7 = arith.constant 0 : index
    %14 = vector.load %arg3[%13, %c0_7] : memref<104x32xf32, #tpu.memory_space<vmem>>, vector<1x32xf32>
    %15 = vector.broadcast %12 : f32 to vector<1x32xf32>
    %16 = arith.mulf %14, %15 : vector<1x32xf32>
    %c1_8 = arith.constant 1 : index
    %c0_9 = arith.constant 0 : index
    %17 = vector.load %arg7[%c1_8, %c0_9] : memref<8x32xf32, #tpu.memory_space<vmem>>, vector<1x32xf32>
    tpu.vector_store %arg7[%c1_8, %c0_9], %16 {strides = array<i32>} : memref<8x32xf32, #tpu.memory_space<vmem>>, vector<1x32xf32>,
    %c2 = arith.constant 2 : index
    %18 = memref.load %arg1[%c2] : memref<6xi32, #tpu.memory_space<smem>>
    %c2_10 = arith.constant 2 : index
    %19 = memref.load %arg2[%c2_10] : memref<6xi32, #tpu.memory_space<smem>>
    %20 = arith.sitofp %19 : i32 to f32
    %21 = arith.index_cast %18 : i32 to index
    %c0_11 = arith.constant 0 : index
    %22 = vector.load %arg3[%21, %c0_11] : memref<104x32xf32, #tpu.memory_space<vmem>>, vector<1x32xf32>
    %23 = vector.broadcast %20 : f32 to vector<1x32xf32>
    %24 = arith.mulf %22, %23 : vector<1x32xf32>
    %c2_12 = arith.constant 2 : index
    %c0_13 = arith.constant 0 : index
    %25 = vector.load %arg7[%c2_12, %c0_13] : memref<8x32xf32, #tpu.memory_space<vmem>>, vector<1x32xf32>
    tpu.vector_store %arg7[%c2_12, %c0_13], %24 {strides = array<i32>} : memref<8x32xf32, #tpu.memory_space<vmem>>, vector<1x32xf32>,
    %c3 = arith.constant 3 : index
    %26 = memref.load %arg1[%c3] : memref<6xi32, #tpu.memory_space<smem>>
    %c3_14 = arith.constant 3 : index
    %27 = memref.load %arg2[%c3_14] : memref<6xi32, #tpu.memory_space<smem>>
    %28 = arith.sitofp %27 : i32 to f32
    %29 = arith.index_cast %26 : i32 to index
    %c0_15 = arith.constant 0 : index
    %30 = vector.load %arg3[%29, %c0_15] : memref<104x32xf32, #tpu.memory_space<vmem>>, vector<1x32xf32>
    %31 = vector.broadcast %28 : f32 to vector<1x32xf32>
    %32 = arith.mulf %30, %31 : vector<1x32xf32>
    %c3_16 = arith.constant 3 : index
    %c0_17 = arith.constant 0 : index
    %33 = vector.load %arg7[%c3_16, %c0_17] : memref<8x32xf32, #tpu.memory_space<vmem>>, vector<1x32xf32>
    tpu.vector_store %arg7[%c3_16, %c0_17], %32 {strides = array<i32>} : memref<8x32xf32, #tpu.memory_space<vmem>>, vector<1x32xf32>,
    %c4 = arith.constant 4 : index
    %34 = memref.load %arg1[%c4] : memref<6xi32, #tpu.memory_space<smem>>
    %c4_18 = arith.constant 4 : index
    %35 = memref.load %arg2[%c4_18] : memref<6xi32, #tpu.memory_space<smem>>
    %36 = arith.sitofp %35 : i32 to f32
    %37 = arith.index_cast %34 : i32 to index
    %c0_19 = arith.constant 0 : index
    %38 = vector.load %arg3[%37, %c0_19] : memref<104x32xf32, #tpu.memory_space<vmem>>, vector<1x32xf32>
    %39 = vector.broadcast %36 : f32 to vector<1x32xf32>
    %40 = arith.mulf %38, %39 : vector<1x32xf32>
    %c4_20 = arith.constant 4 : index
    %c0_21 = arith.constant 0 : index
    %41 = vector.load %arg7[%c4_20, %c0_21] : memref<8x32xf32, #tpu.memory_space<vmem>>, vector<1x32xf32>
    tpu.vector_store %arg7[%c4_20, %c0_21], %40 {strides = array<i32>} : memref<8x32xf32, #tpu.memory_space<vmem>>, vector<1x32xf32>,
    %c5 = arith.constant 5 : index
    %42 = memref.load %arg1[%c5] : memref<6xi32, #tpu.memory_space<smem>>
    %c5_22 = arith.constant 5 : index
    %43 = memref.load %arg2[%c5_22] : memref<6xi32, #tpu.memory_space<smem>>
    %44 = arith.sitofp %43 : i32 to f32
    %45 = arith.index_cast %42 : i32 to index
    %c0_23 = arith.constant 0 : index
    %46 = vector.load %arg3[%45, %c0_23] : memref<104x32xf32, #tpu.memory_space<vmem>>, vector<1x32xf32>
    %47 = vector.broadcast %44 : f32 to vector<1x32xf32>
    %48 = arith.mulf %46, %47 : vector<1x32xf32>
    %c5_24 = arith.constant 5 : index
    %c0_25 = arith.constant 0 : index
    %49 = vector.load %arg7[%c5_24, %c0_25] : memref<8x32xf32, #tpu.memory_space<vmem>>, vector<1x32xf32>
    tpu.vector_store %arg7[%c5_24, %c0_25], %48 {strides = array<i32>} : memref<8x32xf32, #tpu.memory_space<vmem>>, vector<1x32xf32>,
    %c0_26 = arith.constant 0 : index
    %c0_27 = arith.constant 0 : index
    %50 = vector.load %arg5[%c0_26, %c0_27] : memref<8x128xf32, #tpu.memory_space<vmem>>, vector<1x128xf32>
    %c1_28 = arith.constant 1 : index
    %c0_29 = arith.constant 0 : index
    %51 = vector.load %arg5[%c1_28, %c0_29] : memref<8x128xf32, #tpu.memory_space<vmem>>, vector<1x128xf32>
    %c2_30 = arith.constant 2 : index
    %c0_31 = arith.constant 0 : index
    %52 = vector.load %arg5[%c2_30, %c0_31] : memref<8x128xf32, #tpu.memory_space<vmem>>, vector<1x128xf32>
    %c0_32 = arith.constant 0 : index
    %c0_33 = arith.constant 0 : index
    %53 = vector.load %arg7[%c0_32, %c0_33] : memref<8x32xf32, #tpu.memory_space<vmem>>, vector<8x32xf32>
    %c0_34 = arith.constant 0 : index
    %c0_35 = arith.constant 0 : index
    %54 = vector.load %arg4[%c0_34, %c0_35] : memref<32x128xf32, #tpu.memory_space<vmem>>, vector<32x128xf32>
    %cst_36 = arith.constant dense<0.000000e+00> : vector<8x128xf32>
    %55 = tpu.matmul %53, %54, %cst_36 {dimension_numbers = #tpu.dot_dimension_numbers<[1], [0], [0], [1], [0, 0, 1, 1], [], []>} : vector<8x32xf32>, vector<32x128xf32>, vector<8x128xf32> -> vector<8x128xf32>
    %56 = vector.broadcast %50 : vector<1x128xf32> to vector<8x128xf32>
    %57 = arith.addf %55, %56 : vector<8x128xf32>
    %58 = math.tanh %57 : vector<8x128xf32>
    %59 = tpu.iota {dimensions = array<i32: 1>} : vector<8x128xi32>
    %c32_i32 = arith.constant 32 : i32
    %60 = vector.broadcast %c32_i32 : i32 to vector<8x128xi32>
    %61 = arith.cmpi slt, %59, %60 : vector<8x128xi32>
    %cst_37 = arith.constant dense<0.000000e+00> : vector<8xf32>
    %62 = vector.multi_reduction <add>, %58, %cst_37 [1] : vector<8x128xf32> to vector<8xf32>
    %63 = vector.shape_cast %62 : vector<8xf32> to vector<8x1xf32>
    %cst_38 = arith.constant 3.125000e-02 : f32
    %64 = vector.broadcast %cst_38 : f32 to vector<8x1xf32>
    %65 = arith.mulf %63, %64 : vector<8x1xf32>
    %66 = vector.broadcast %65 : vector<8x1xf32> to vector<8x128xf32>
    %67 = arith.subf %58, %66 : vector<8x128xf32>
    %cst_39 = arith.constant 0.000000e+00 : f32
    %68 = vector.broadcast %cst_39 : f32 to vector<8x128xf32>
    %69 = arith.select %61, %67, %68 : vector<8x128xi1>, vector<8x128xf32>
    %70 = arith.mulf %69, %69 : vector<8x128xf32>
    %cst_40 = arith.constant dense<0.000000e+00> : vector<8xf32>
    %71 = vector.multi_reduction <add>, %70, %cst_40 [1] : vector<8x128xf32> to vector<8xf32>
    %72 = vector.shape_cast %71 : vector<8xf32> to vector<8x1xf32>
    %cst_41 = arith.constant 3.125000e-02 : f32
    %73 = vector.broadcast %cst_41 : f32 to vector<8x1xf32>
    %74 = arith.mulf %72, %73 : vector<8x1xf32>
    %cst_42 = arith.constant 9.99999974E-6 : f32
    %75 = vector.broadcast %cst_42 : f32 to vector<8x1xf32>
    %76 = arith.addf %74, %75 : vector<8x1xf32>
    %77 = math.rsqrt %76 : vector<8x1xf32>
    %78 = vector.broadcast %77 : vector<8x1xf32> to vector<8x128xf32>
    %79 = arith.mulf %69, %78 : vector<8x128xf32>
    %80 = vector.broadcast %51 : vector<1x128xf32> to vector<8x128xf32>
    %81 = arith.mulf %79, %80 : vector<8x128xf32>
    %82 = vector.broadcast %52 : vector<1x128xf32> to vector<8x128xf32>
    %83 = arith.addf %81, %82 : vector<8x128xf32>
    %cst_43 = arith.constant dense<0.000000e+00> : vector<8x8xf32>
    %84 = tpu.matmul %83, %83, %cst_43 {dimension_numbers = #tpu.dot_dimension_numbers<[1], [1], [0], [0], [0, 0, 1, 0], [], []>} : vector<8x128xf32>, vector<8x128xf32>, vector<8x8xf32> -> vector<8x8xf32>
    %85 = tpu.iota {dimensions = array<i32: 0>} : vector<8x8xi32>
    %86 = tpu.iota {dimensions = array<i32: 1>} : vector<8x8xi32>
    %c2_i32 = arith.constant 2 : i32
    %87 = vector.broadcast %c2_i32 : i32 to vector<8x8xi32>
    %88 = arith.addi %85, %87 : vector<8x8xi32>
    %89 = arith.cmpi eq, %86, %88 : vector<8x8xi32>
    %c4_i32 = arith.constant 4 : i32
    %90 = vector.broadcast %c4_i32 : i32 to vector<8x8xi32>
    %91 = arith.addi %85, %90 : vector<8x8xi32>
    %92 = arith.cmpi eq, %86, %91 : vector<8x8xi32>
    %cst_44 = arith.constant 0.000000e+00 : f32
    %93 = vector.broadcast %cst_44 : f32 to vector<8x8xf32>
    %94 = arith.select %89, %84, %93 : vector<8x8xi1>, vector<8x8xf32>
    %cst_45 = arith.constant dense<0.000000e+00> : vector<8xf32>
    %95 = vector.multi_reduction <add>, %94, %cst_45 [1] : vector<8x8xf32> to vector<8xf32>
    %96 = vector.shape_cast %95 : vector<8xf32> to vector<8x1xf32>
    %cst_46 = arith.constant 0.000000e+00 : f32
    %97 = vector.broadcast %cst_46 : f32 to vector<8x8xf32>
    %98 = arith.select %92, %84, %97 : vector<8x8xi1>, vector<8x8xf32>
    %cst_47 = arith.constant dense<0.000000e+00> : vector<8xf32>
    %99 = vector.multi_reduction <add>, %98, %cst_47 [1] : vector<8x8xf32> to vector<8xf32>
    %100 = vector.shape_cast %99 : vector<8xf32> to vector<8x1xf32>
    %101 = arith.maximumf %96, %100 : vector<8x1xf32>
    %102 = arith.subf %96, %101 : vector<8x1xf32>
    %103 = math.exp %102 : vector<8x1xf32>
    %104 = arith.subf %100, %101 : vector<8x1xf32>
    %105 = math.exp %104 : vector<8x1xf32>
    %106 = arith.addf %103, %105 : vector<8x1xf32>
    %107 = math.log %106 : vector<8x1xf32>
    %108 = arith.addf %101, %107 : vector<8x1xf32>
    %109 = arith.subf %96, %108 : vector<8x1xf32>
    %cst_48 = arith.constant 0.000000e+00 : f32
    %110 = vector.broadcast %cst_48 : f32 to vector<8x1xf32>
    %111 = arith.subf %110, %109 : vector<8x1xf32>
    %112 = tpu.iota {dimensions = array<i32: 0>} : vector<8x1xi32>
    %c2_i32_49 = arith.constant 2 : i32
    %113 = vector.broadcast %c2_i32_49 : i32 to vector<8x1xi32>
    %114 = arith.cmpi slt, %112, %113 : vector<8x1xi32>
    %cst_50 = arith.constant 0.000000e+00 : f32
    %115 = vector.broadcast %cst_50 : f32 to vector<8x1xf32>
    %116 = arith.select %114, %111, %115 : vector<8x1xi1>, vector<8x1xf32>
    %117 = vector.shape_cast %116 : vector<8x1xf32> to vector<1x8x1xf32>
    %cst_51 = arith.constant dense<0.000000e+00> : vector<1xf32>
    %118 = vector.multi_reduction <add>, %117, %cst_51 [1, 2] : vector<1x8x1xf32> to vector<1xf32>
    %119 = vector.shape_cast %118 : vector<1xf32> to vector<1x1x1xf32>
    %120 = vector.extract %119[0, 0, 0] : f32 from vector<1x1x1xf32>
    %cst_52 = arith.constant 5.000000e-01 : f32
    %121 = arith.mulf %120, %cst_52 : f32
    %c0_53 = arith.constant 0 : index
    %c0_54 = arith.constant 0 : index
    %122 = memref.load %arg6[%c0_53, %c0_54] : memref<1x1xf32, #tpu.memory_space<smem>>
    memref.store %121, %arg6[%c0_53, %c0_54] : memref<1x1xf32, #tpu.memory_space<smem>>
    return
  }
  func.func @transform_0(%arg0: i32, %arg1: memref<6xi32, #tpu.memory_space<smem>>, %arg2: memref<6xi32, #tpu.memory_space<smem>>) -> (i32, i32) {
    %c0_i32 = arith.constant 0 : i32
    %c0_i32_0 = arith.constant 0 : i32
    %c0_i32_1 = arith.constant 0 : i32
    return %c0_i32, %c0_i32_0 : i32, i32
  }
  func.func @transform_1(%arg0: i32, %arg1: memref<6xi32, #tpu.memory_space<smem>>, %arg2: memref<6xi32, #tpu.memory_space<smem>>) -> (i32, i32) {
    %c0_i32 = arith.constant 0 : i32
    %c0_i32_0 = arith.constant 0 : i32
    %c0_i32_1 = arith.constant 0 : i32
    return %c0_i32, %c0_i32_0 : i32, i32
  }
  func.func @transform_2(%arg0: i32, %arg1: memref<6xi32, #tpu.memory_space<smem>>, %arg2: memref<6xi32, #tpu.memory_space<smem>>) -> (i32, i32) {
    %c0_i32 = arith.constant 0 : i32
    %c0_i32_0 = arith.constant 0 : i32
    %c0_i32_1 = arith.constant 0 : i32
    return %c0_i32, %c0_i32_0 : i32, i32
  }
  func.func @transform_3(%arg0: i32, %arg1: memref<6xi32, #tpu.memory_space<smem>>, %arg2: memref<6xi32, #tpu.memory_space<smem>>) -> (i32, i32) {
    %c0_i32 = arith.constant 0 : i32
    %c0_i32_0 = arith.constant 0 : i32
    %c0_i32_1 = arith.constant 0 : i32
    return %c0_i32, %c0_i32_0 : i32, i32
  }
}

</mosaic_0001>

<bundles_post_ra>
// kernel: eledic_nll_ln_forward.1
= control target key start
LH: loop header
LB: loop body
LE: loop exit
PB: predicated region body
PF: predicated region fallthrough
CT: control target
= control target key end

     0   :  { %s503_s0 = inlined_call_operand.vmem [shape: s32[6], index: 0, kind: input, shape index: {}]   ;;  %s504_s2 = inlined_call_operand.vmem [shape: f32[104,32], index: 2, kind: input, shape index: {}]   ;;  %s505_s3 = inlined_call_operand.vmem [shape: f32[32,128], index: 3, kind: input, shape index: {}]   ;;  %s506_s4 = inlined_call_operand.vmem [shape: f32[8,128], index: 4, kind: input, shape index: {}]   ;;  %s507_s5 = inlined_call_operand.hbm [shape: f32[1,1], index: 5, kind: output, shape index: {}]   ;;  %s508_s1 = inlined_call_operand.vmem [shape: s32[6], index: 1, kind: input, shape index: {}]  }
   0x1   :  { %s10_s20 = sshll.u32 %s503_s0, 4  ;;  %s14_s23 = sshll.u32 %s508_s1, 4  ;;  %s11_s20 = int_to_ptr.vmem [resolvable:$true] %s10_s20  ;;  %s15_s23 = int_to_ptr.vmem [resolvable:$true] %s14_s23 }
   0x2   :  { %s376_s24 = scalar_lea.vmem %s11_s20, 16  ;;  %p381_p1 = scmp.lt.s32.totalorder %s11_s20, %s11_s20 }
   0x3   :  { %p377_p0 = scmp.ne.s32.totalorder %s11_s20, %s376_s24  ;;  %p382_p2 = scmp.lt.s32.totalorder %s376_s24, %s376_s24 }
   0x5   :  { %p383_p3 = por %p382_p2, %p381_p1 }
   0x7   :  { %p384_p4 = pnand %p383_p3, %p377_p0 }
   0x9   :  { %387 = shalt.err (!%p384_p4)  }
   0xa   :  { %s412_s25 = smov [#allocation4]   ;;  %s388_s26 = scalar_lea.vmem %s15_s23, 16 }
   0xb   :  { %13 = dma.vmem_to_smem %s11_s20, 16, %s412_s25, [#allocation3] }
   0xc   :  { %p389_p5 = scmp.ne.s32.totalorder %s15_s23, %s388_s26  ;;  %p393_p6 = scmp.lt.s32.totalorder %s15_s23, %s15_s23 }
   0xd   :  { %p394_p7 = scmp.lt.s32.totalorder %s388_s26, %s388_s26 }
   0xf   :  { %p395_p8 = por %p394_p7, %p393_p6 }
  0x11   :  { %p396_p9 = pnand %p395_p8, %p389_p5 }
  0x13   :  { %399 = shalt.err (!%p396_p9)  }
  0x14   :  { %s413_s0 = smov [#allocation5]  }
  0x15   :  { %17 = dma.vmem_to_smem %s15_s23, 16, %s413_s0, [#allocation3] }
  0x16   :  { %408 = dma.done.wait [#allocation3], 32 }
  0x17   :  { %409 = vsyncadd [#allocation3], 4294967264 }
  0x18   :  { %19 = sfence }
  0x19   :  { %v85_v0 = vld [vmem:[%s505_s3 + $0x18] sm:$0xff]  ;;  %vm27_vm0 = vcmask 261120   ;;  %v414_v1 = vmov 0.0   ;;  %v84_v2 = vld [vmem:[%s505_s3 + $0x10] sm:$0xff]  ;;  %vm415_vm1 = vmmov 0   ;;  %s29_s30 = sld [smem:[#allocation4]] }
  0x1a   :  { %343 = vmatprep.subr.mxu0 %v414_v1  ;;  %351 = vmatprep.mubr.msk.f32.mxu0 %vm415_vm1, %v414_v1  ;;  %28 = vst.msk [vmem:[#allocation2] sm:$0xff] %vm27_vm0, %v414_v1  ;;  %s30_s6 = sld [smem:[#allocation5]] }
  0x1b   :  { %344 = vmatpush3.msra.mxu0 %v85_v0  ;;  %354 = vmatprep.subr.mxu1 %v414_v1 }
  0x1c   :  { %20 = vsyncpa [#allocation7], 0  ;;  %345 = vmatprep.subr.mxu0 %v414_v1  ;;  %v83_v3 = vld [vmem:[%s505_s3 + $0x8] sm:$0xff]  ;;  %s322_s9 = sld [smem:[#allocation4 + $0x1]]  ;;  %356 = vmatprep.mubr.msk.f32.mxu1 %vm415_vm1, %v414_v1  ;;  %v82_v4 = vld [vmem:[%s505_s3] sm:$0xff]  ;;  %vm36_vm2 = vcmask 253952   ;;  %v164_v29 = vlaneseq }
  0x1d   :  { %346 = vmatpush3.msra.mxu0 %v84_v2  ;;  %s323_s10 = sld [smem:[#allocation5 + $0x1]]  ;;  %v332_v24 = vld [vmem:[%s506_s4] ss:$0 sm:$0xff]  ;;  %v334_v40 = vld [vmem:[%s506_s4 + $0x1] ss:$0 sm:$0xff]  ;;  %vm266_vm5 = vcmask 64512  }
  0x1e   :  { %347 = vmatprep.subr.mxu0 %v414_v1  ;;  %s324_s13 = sld [smem:[#allocation4 + $0x2]]  ;;  %v165_v30 = vand.u32 127, %v164_v29  ;;  %v335_v42 = vld [vmem:[%s506_s4 + $0x2] ss:$0 sm:$0xff]  ;;  %v260_v45 = vshrl.u32 %v164_v29, 7  ;;  %vm289_vm8 = vcmask 7168  }
  0x1f   :  { %348 = vmatpush3.msra.mxu0 %v83_v3  ;;  %s325_s14 = sld [smem:[#allocation5 + $0x2]]  ;;  %s32_s17 = scalar_lea.vmem %s504_s2, %s29_s30 }
  0x20   :  { %349 = vmatprep.subr.mxu0 %v414_v1  ;;  %s326_s18 = sld [smem:[#allocation4 + $0x3]]  ;;  %s31_s19 = scvt.s32.f32 %s30_s6  ;;  %v33_v5 = vld [vmem:[%s32_s17] sm:$0x1]  ;;  %vm166_vm3 = vcmp.lt.s32.totalorder %v165_v30, 32  ;;  %v261_v46 = vadd.s32 2, %v260_v45  ;;  %v263_v47 = vadd.s32 4, %v260_v45 }
  0x21   :  { %350 = vmatpush3.msra.mxu0 %v82_v4  ;;  %s327_s20 = sld [smem:[#allocation5 + $0x3]]  ;;  %vm287_vm7 = vcmp.lt.s32.totalorder %v260_v45, 2 }
  0x22   :  { %s41_s23 = scalar_lea.vmem %s504_s2, %s322_s9  ;;  %s328_s24 = sld [smem:[#allocation4 + $0x4]]  ;;  %v34_v6 = vstv %s31_s19  ;;  %vm262_vm4 = vcmp.eq.s32.totalorder %v165_v30, %v261_v46  ;;  %vm264_vm6 = vcmp.eq.s32.totalorder %v165_v30, %v263_v47 }
  0x23   :  { %s40_s3 = scvt.s32.f32 %s323_s10  ;;  %v42_v7 = vld [vmem:[%s41_s23] sm:$0x1]  ;;  %s329_s25 = sld [smem:[#allocation5 + $0x4]]  ;;  %v35_v8 = vmul.f32 %v34_v6, %v33_v5 }
  0x24   :  { %s49_s1 = scalar_lea.vmem %s504_s2, %s324_s13  ;;  %s330_s27 = sld [smem:[#allocation4 + $0x5]] }
  0x25   :  { %v43_v9 = vstv %s40_s3  ;;  %s48_s28 = scvt.s32.f32 %s325_s14  ;;  %v50_v10 = vld [vmem:[%s49_s1] sm:$0x1]  ;;  %s331_s29 = sld [smem:[#allocation5 + $0x5]]  ;;  %37 = vst.msk [vmem:[#allocation2] sm:$0x1] %vm36_vm2, %v35_v8 }
  0x26   :  { %v44_v11 = vmul.f32 %v43_v9, %v42_v7  ;;  %s57_s7 = scalar_lea.vmem %s504_s2, %s326_s18  ;;  %s416_s23 = smov [#allocation6]  }
  0x27   :  { %v51_v12 = vstv %s48_s28  ;;  %s56_s8 = scvt.s32.f32 %s327_s20  ;;  %v58_v13 = vld [vmem:[%s57_s7] sm:$0x1] }
  0x28   :  { %45 = vst.msk [vmem:[#allocation2 + $0x1] sm:$0x1] %vm36_vm2, %v44_v11  ;;  %v52_v14 = vmul.f32 %v51_v12, %v50_v10  ;;  %s65_s11 = scalar_lea.vmem %s504_s2, %s328_s24 }
  0x29   :  { %v59_v15 = vstv %s56_s8  ;;  %s64_s12 = scvt.s32.f32 %s329_s25  ;;  %v66_v16 = vld [vmem:[%s65_s11] sm:$0x1] }
  0x2a   :  { %53 = vst.msk [vmem:[#allocation2 + $0x2] sm:$0x1] %vm36_vm2, %v52_v14  ;;  %v60_v17 = vmul.f32 %v59_v15, %v58_v13  ;;  %s73_s15 = scalar_lea.vmem %s504_s2, %s330_s27 }
  0x2b   :  { %v67_v18 = vstv %s64_s12  ;;  %s72_s16 = scvt.s32.f32 %s331_s29  ;;  %v74_v19 = vld [vmem:[%s73_s15] sm:$0x1] }
  0x2c   :  { %61 = vst.msk [vmem:[#allocation2 + $0x3] sm:$0x1] %vm36_vm2, %v60_v17  ;;  %v68_v20 = vmul.f32 %v67_v18, %v66_v16 }
  0x2d   :  { %v75_v21 = vstv %s72_s16 }
  0x2e   :  { %69 = vst.msk [vmem:[#allocation2 + $0x4] sm:$0x1] %vm36_vm2, %v68_v20  ;;  %v76_v22 = vmul.f32 %v75_v21, %v74_v19 }
  0x30   :  { %77 = vst.msk [vmem:[#allocation2 + $0x5] sm:$0x1] %vm36_vm2, %v76_v22 }
  0x37   :  { %v81_v23 = vld [vmem:[#allocation2] sm:$0xff] }
  0x38   :  { %352 = vmatmul.mubr.msk.f32.vlgmr.msra.gmra.mxu0 %vm27_vm0, %v81_v23 }
  0xf8   :  { %v159_v25 = vpop.f32.mrf.mxu0 }
  0xf9   :  { %v160_v26 = vadd.f32 %v332_v24, %v159_v25 }
  0xfa   :  { %v353_v27 = vpop.f32.mrf.mxu0 }
  0xfb   :  { %366 = vtanh.f32 %v160_v26 }
 0x108   :  { %v367_v28 = vpop.eup %366 }
 0x109   :  { %167 = vadd.xlane.f32.xlu0 %v367_v28 }
 0x192   :  { %v168_v31 = vpop.xlane.xlu0 %167 }
 0x193   :  { %v169_v32 = vmul.f32 0.03125, %v168_v31 }
 0x195   :  { %v170_v33 = vsub.f32 %v367_v28, %v169_v32 }
 0x197   :  { %v171_v34 = vsel %vm166_vm3, %v170_v33, 0.0 }
 0x198   :  { %v172_v35 = vmul.f32 %v171_v34, %v171_v34 }
 0x19a   :  { %173 = vadd.xlane.f32.xlu0 %v172_v35 }
 0x223   :  { %v174_v36 = vpop.xlane.xlu0 %173 }
 0x224   :  { %v175_v37 = vmul.f32 0.03125, %v174_v36 }
 0x226   :  { %v176_v38 = vadd.f32 1e-05, %v175_v37 }
 0x228   :  { %368 = vrsqrt.f32 %v176_v38 }
 0x235   :  { %v369_v39 = vpop.eup %368 }
 0x236   :  { %v178_v41 = vmul.f32 %v369_v39, %v171_v34 }
 0x238   :  { %v183_v43 = vmul.f32 %v334_v40, %v178_v41 }
 0x23a   :  { %v188_v44 = vadd.f32 %v335_v42, %v183_v43 }
 0x23c   :  { %355 = vmatpush3.xpose.msra.mxu1 %v188_v44 }
 0x23f   :  { %357 = vmatmul.mubr.f32.vlgmr.msra.gmra.mxu1 %v188_v44 }
 0x2ff   :  { %v255_v48 = vpop.f32.mrf.mxu1 }
 0x300   :  { %v265_v49 = vsel %vm262_vm4, %v255_v48, 0.0  ;;  %v270_v52 = vsel %vm264_vm6, %v255_v48, 0.0 }
 0x301   :  { %v358_v50 = vpop.f32.mrf.mxu1  ;;  %v267_v51 = vsel %vm266_vm5, %v265_v49, 0.0  ;;  %v271_v53 = vsel %vm266_vm5, %v270_v52, 0.0 }
 0x302   :  { %268 = vadd.xlane.f32.xlu1 %v267_v51 }
 0x306   :  { %272 = vadd.xlane.f32.xlu1 %v271_v53 }
 0x38b   :  { %v269_v54 = vpop.xlane.xlu1 %268 }
 0x38f   :  { %v273_v55 = vpop.xlane.xlu1 %272 }
 0x390   :  { %v274_v56 = vmax.f32 %v269_v54, %v273_v55 }
 0x392   :  { %v275_v57 = vsub.f32 %v269_v54, %v274_v56  ;;  %v278_v58 = vsub.f32 %v273_v55, %v274_v56 }
 0x394   :  { %v276_v59 = vmul.f32 1.442695, %v275_v57  ;;  %v279_v60 = vmul.f32 1.442695, %v278_v58 }
 0x396   :  { %370 = vpow2.f32 %v276_v59 }
 0x397   :  { %372 = vpow2.f32 %v279_v60 }
 0x3a3   :  { %v371_v61 = vpop.eup %370 }
 0x3a4   :  { %v373_v62 = vpop.eup %372 }
 0x3a5   :  { %v281_v63 = vadd.f32 %v373_v62, %v371_v61 }
 0x3a7   :  { %374 = vlog2.f32 %v281_v63 }
 0x3b4   :  { %v375_v0 = vpop.eup %374 }
 0x3b5   :  { %v283_v1 = vmul.f32 0.6931472, %v375_v0 }
 0x3b7   :  { %v284_v2 = vadd.f32 %v283_v1, %v274_v56 }
 0x3b9   :  { %v285_v3 = vsub.f32 %v269_v54, %v284_v2 }
 0x3bb   :  { %v286_v4 = vsub.f32 0.0, %v285_v3 }
 0x3bd   :  { %v288_v5 = vsel %vm287_vm7, %v286_v4, 0.0 }
 0x3be   :  { %v290_v6 = vsel %vm289_vm8, %v288_v5, 0.0 }
 0x3bf   :  { %291 = vadd.xlane.f32.xlu0 %v290_v6 }
 0x448   :  { %v292_v7 = vpop.xlane.xlu0 %291 }
 0x449   :  { %v293_v8 = vrot.slane %v292_v7, 4 }
 0x44b   :  { %v294_v9 = vadd.f32 %v293_v8, %v292_v7 }
 0x44d   :  { %v295_v10 = vrot.slane %v294_v9, 2 }
 0x44f   :  { %v296_v11 = vadd.f32 %v295_v10, %v294_v9 }
 0x451   :  { %v297_v12 = vrot.slane %v296_v11, 1 }
 0x453   :  { %v298_v13 = vadd.f32 %v297_v12, %v296_v11 }
 0x455   :  { %359 = vpush %v298_v13 }
 0x486   :  { %s360_s4 = spop %359 }
 0x487   :  { %s300_s22 = smul.f32 0.5, %s360_s4 }
 0x489   :  { %302 = sst [smem:[#allocation6]] %s300_s22 }
 0x48a   :  { %310 = dma.smem_to_hbm %s416_s23, 16, %s507_s5, [#allocation7]  }
 0x48b   :  { %410 = dma.done.wait [#allocation7], 16  }
 0x48c   :  { %411 = vsyncadd [#allocation7], 4294967280 }
 0x48d   :  { %314 = sfence }
 0x48e   :  { %315 = vsyncpa [#allocation7], 1 }

</bundles_post_ra>
